<compile_context>
chip_gen: v7x
topology: tpu7x:2x2x1
jax: 0.10.0
libtpu: 0.0.40
codegen_flags: <defaults>
</compile_context>

<pallas_src>
import functools

import jax
import jax.numpy as jnp
from jax import lax
from jax.experimental import pallas as pl
from jax.experimental.pallas import tpu as pltpu


def _round_up(x, m):
    return (x + m - 1) // m * m


def _vmem_capacity_bytes():
    try:
        info = pltpu.get_tpu_info()
        cap = getattr(info, "vmem_capacity_bytes", None)
        if cap:
            return int(cap)
    except Exception:
        pass
    return 64 * 1024 * 1024  # conservative default (v7x per-core VMEM)


def supcon_admargin_kernel(feat_ref, cols_ref, rows_ref, out_ref, *,
                           temperature, base_temperature, norm_val,
                           tile_b, batch_size):
    """One anchor-row tile against the full (resident) contrast set.

    feat_ref : [Bp, D]  resident features (bf16 feeds the MXU, f32 acc)
    cols_ref : [Bp, 2]  resident per-sample columns: [:,0]=round(label,1), [:,1]=dist
    rows_ref : [2, Bp]  resident per-sample rows:    [0,:]=round(label,1), [1,:]=dist
    out_ref  : [T, 1]   per-anchor loss (f32)
    """
    i = pl.program_id(0)
    row_start = pl.multiple_of(i * tile_b, tile_b)
    inv_t = 1.0 / temperature

    feat_all = feat_ref[...]                               # [Bp, D]
    feat_tile = feat_ref[pl.ds(row_start, tile_b), :]      # [T,  D]

    # anchor . contrast on the MXU; the transpose is folded into the
    # contraction dims (contract dim 1 of both operands), f32 accumulation.
    s = lax.dot_general(feat_tile, feat_all,
                        dimension_numbers=(((1,), (1,)), ((), ())),
                        preferred_element_type=jnp.float32)   # [T, Bp]

    cols = cols_ref[pl.ds(row_start, tile_b), :]           # [T, 2]
    lab_col = cols[:, 0:1]                                 # [T, 1]
    dist_col = cols[:, 1:2]                                # [T, 1]
    lab_row = rows_ref[0:1, :]                             # [1, Bp]
    dist_row = rows_ref[1:2, :]                            # [1, Bp]

    # Validity / self masks from iotas: no valid_row input and no subtractive
    # diagonal removal (matches the torch reference, which zeroes the diagonal
    # of exp_logits before summing).
    col_idx = lax.broadcasted_iota(jnp.int32, s.shape, 1)
    row_idx = lax.broadcasted_iota(jnp.int32, s.shape, 0) + row_start
    valid = col_idx < batch_size                           # real contrast column
    keep = jnp.logical_and(valid, col_idx != row_idx)      # ... and not self

    # mask[i, j] = 1 iff round(label_i, 1) == round(label_j, 1)
    same = lab_col == lab_row                              # [T, Bp] bool
    # clip(|dd| * nv, 0, 2) / T  ==  clip(|dd| * (nv/T), 0, 2/T)  (folded)
    margin = jnp.clip(jnp.abs(dist_col - dist_row) * (norm_val * inv_t),
                      0.0, 2.0 * inv_t)
    adc = s * inv_t + jnp.where(same, 0.0, margin)         # [T, Bp]

    neg_big = jnp.float32(-1e30)
    # Row max over the real columns (diagonal included, as in the reference);
    # it cancels exactly downstream, it only stabilizes the exp.
    row_max = jnp.max(jnp.where(valid, adc, neg_big), axis=1, keepdims=True)

    # Z_i = sum_{j valid, j != i} exp(adc[i, j] - row_max[i])
    z = jnp.sum(jnp.exp(jnp.where(keep, adc, neg_big) - row_max),
                axis=1, keepdims=True)                     # [T, 1]

    posk = jnp.logical_and(same, keep)                     # positives (no self/pad)
    sum_mask = jnp.sum(posk.astype(jnp.float32), axis=1, keepdims=True)
    sum_pos_adc = jnp.sum(jnp.where(posk, adc, 0.0), axis=1, keepdims=True)

    # sum_j mask*log_prob = sum(mask*adc) - sum_mask * (row_max + log z)
    num = sum_pos_adc - sum_mask * (row_max + jnp.log(z))
    mean_log_prob_pos = (num + 1e-5) / (sum_mask + 1e-5)
    out_ref[...] = -(temperature / base_temperature) * mean_log_prob_pos


def _pick_tile(B, D, feat_itemsize, budget_bytes, tmp_factor=6):
    """Largest 16-aligned row tile whose resident features + live [tile, Bp]
    f32 temporaries fit the VMEM budget; >=2 tiles whenever that helps the
    v7x megacore split."""
    if B <= 32:
        return _round_up(max(B, 16), 16)
    if B <= 128:
        # >= 2 row tiles so both v7x TensorCores get work.
        return _round_up(pl.cdiv(B, 2), 16)
    for t in (256, 128, 64, 32):
        bp = _round_up(B, t)
        need = (bp * D * feat_itemsize            # resident features (single-buffered)
                + tmp_factor * t * bp * 4         # live [t, Bp] f32 temporaries
                + 4 * bp * 4                      # resident label/dist vectors
                + (2 << 20))                      # slack / compiler scratch
        if need <= budget_bytes and bp // t >= 2:
            return t
    return 32


def supcon_loss_admargin(features, labels, dist, *, temperature=1.0,
                         base_temperature=1.0, norm_val=0.2, scale_s=150.0,
                         matmul_dtype=jnp.bfloat16):
    """Pallas implementation of SupConLoss_admargin.forward (labels path,
    contrast_mode='all'; n_views == 1 after the unsqueeze(1) in the reference).

    `scale_s` is accepted for signature fidelity but -- exactly like the
    reference forward -- never used.
    """
    del scale_s  # unused in the reference forward path as well

    B, D = features.shape
    labels = jnp.asarray(labels, jnp.float32).reshape(B)
    dist = jnp.asarray(dist, jnp.float32).reshape(B)
    lab_r = jnp.round(labels * 10.0) / 10.0      # round(label, 1)

    # f32 features -> bf16 for the MXU (f32 matmul is multi-pass on the bf16
    # MXU); all elementwise / softmax math stays f32 in-kernel.
    feats = features
    if matmul_dtype is not None and feats.dtype == jnp.float32:
        feats = feats.astype(matmul_dtype)

    cap = _vmem_capacity_bytes()
    # v5e / v6e: 128 MiB physical VMEM -> allow ~100 MiB scoped.
    # v7x: 64 MiB physical -> cap at ~52 MiB, leaving internal-scratch headroom.
    budget = 100 * 2**20 if cap >= 100 * 2**20 else 52 * 2**20

    tile_b = _pick_tile(B, D, feats.dtype.itemsize, budget)
    bp = _round_up(B, tile_b)
    pad = bp - B
    num_tiles = bp // tile_b

    # Padding: zero features, sentinel label (never equals a real rounded
    # label), zero dist.  Padded contrast columns are masked in-kernel via an
    # iota compare against the true batch size; padded anchor rows are sliced
    # away before the final mean.
    feat_p = jnp.pad(feats, ((0, pad), (0, 0)))
    lab_p = jnp.pad(lab_r, (0, pad), constant_values=3.0e38)
    dist_p = jnp.pad(dist, (0, pad))

    cols = jnp.stack([lab_p, dist_p], axis=1)    # [bp, 2]  (per-tile column view)
    rows = jnp.stack([lab_p, dist_p], axis=0)    # [2, bp]  (resident row view)

    kernel = functools.partial(
        supcon_admargin_kernel,
        temperature=float(temperature),
        base_temperature=float(base_temperature),
        norm_val=float(norm_val),
        tile_b=tile_b,
        batch_size=B,
    )

    def build(single_buffer_resident):
        resident_kw = {}
        feat_mult = 2
        if single_buffer_resident:
            # Constant index_map -> the block never changes; double-buffering
            # it only burns VMEM (matters most on v7x's 64 MiB).
            resident_kw = dict(pipeline_mode=pl.Buffered(1))
            feat_mult = 1
        feat_bytes = feat_mult * bp * D * feats.dtype.itemsize
        vec_bytes = feat_mult * 4 * bp * 4
        tmp_bytes = 6 * tile_b * bp * 4
        vmem_limit = int(min(budget,
                             max(32 * 1024 * 1024,
                                 feat_bytes + vec_bytes + tmp_bytes + (4 << 20))))
        grid_spec = pltpu.PrefetchScalarGridSpec(
            num_scalar_prefetch=0,
            grid=(num_tiles,),
            in_specs=[
                pl.BlockSpec((bp, D), lambda i: (0, 0), **resident_kw),   # features
                pl.BlockSpec((bp, 2), lambda i: (0, 0), **resident_kw),   # label/dist cols
                pl.BlockSpec((2, bp), lambda i: (0, 0), **resident_kw),   # label/dist rows
            ],
            out_specs=pl.BlockSpec((tile_b, 1), lambda i: (i, 0)),
        )
        return pl.pallas_call(
            kernel,
            out_shape=jax.ShapeDtypeStruct((bp, 1), jnp.float32),
            grid_spec=grid_spec,
            compiler_params=pltpu.CompilerParams(
                dimension_semantics=("parallel",),   # independent row tiles
                vmem_limit_bytes=vmem_limit,
            ),
            cost_estimate=pl.CostEstimate(
                flops=2 * bp * bp * D,
                transcendentals=bp * bp,
                bytes_accessed=bp * D * feats.dtype.itemsize + 6 * bp * 4,
            ),
        )

    try:
        per_anchor = build(True)(feat_p, cols, rows)
    except Exception:
        # Fallback for runtimes without BlockSpec(pipeline_mode=pl.Buffered(1)):
        # default double-buffered resident blocks.
        per_anchor = build(False)(feat_p, cols, rows)

    # Mean over the B real anchors (padded rows sliced away, never summed).
    return jnp.sum(per_anchor[:B, 0]) / B


def _reference_loss(features, labels, dist, *, temperature=1.0,
                    base_temperature=1.0, norm_val=0.2):
    """Direct JAX transcription of the torch forward (labels path, n_views=1)."""
    feats = features.astype(jnp.float32)
    b = feats.shape[0]
    lab = jnp.asarray(labels, jnp.float32).reshape(b, 1)
    d = jnp.asarray(dist, jnp.float32).reshape(b, 1)
    lab_r = jnp.round(lab * 10.0) / 10.0
    mask = (lab_r == lab_r.T).astype(jnp.float32)
    dist_abdiff = jnp.clip(jnp.abs(d - d.T) * norm_val, 0.0, 2.0)
    adc = (feats @ feats.T + (1.0 - mask) * dist_abdiff) / temperature
    logits = adc - jnp.max(adc, axis=1, keepdims=True)
    logits_mask = 1.0 - jnp.eye(b, dtype=jnp.float32)
    mask = mask * logits_mask
    exp_logits = jnp.exp(logits) * logits_mask
    log_prob = logits - jnp.log(jnp.sum(exp_logits, axis=1, keepdims=True))
    mean_lpp = ((jnp.sum(mask * log_prob, axis=1) + 1e-5)
                / (jnp.sum(mask, axis=1) + 1e-5))
    return jnp.mean(-(temperature / base_temperature) * mean_lpp)


if __name__ == "__main__":
    B, D = 8, 32
    key = jax.random.PRNGKey(0)
    kf, kl, kd = jax.random.split(key, 3)

    feats = jax.random.normal(kf, (B, D), dtype=jnp.float32)
    feats = feats / jnp.linalg.norm(feats, axis=-1, keepdims=True)  # unit-norm embeddings
    # coarse labels so several anchors share a class (exercises the positives path)
    labels = jnp.round(jax.random.uniform(kl, (B,), dtype=jnp.float32) * 2.0)
    dist = jax.random.uniform(kd, (B, 1), dtype=jnp.float32) * 5.0

    loss = supcon_loss_admargin(feats, labels, dist)
    jax.block_until_ready(loss)

    # Reference on the same bf16-rounded features (kernel feeds bf16 to the MXU).
    feats_bf = feats.astype(jnp.bfloat16).astype(jnp.float32)
    ref = _reference_loss(feats_bf, labels, dist)
    if not bool(jnp.allclose(loss, ref, rtol=2e-3, atol=2e-3)):
        raise SystemExit(f"mismatch: kernel={float(loss)} ref={float(ref)}")
    print("KERNEL_OK")
</pallas_src>

<mosaic_0001>
module attributes {stable_mosaic.version = 11 : i64} {
  func.func @supcon_admargin_kernel(%arg0: i32, %arg1: memref<16x32xbf16, #tpu.memory_space<vmem>>, %arg2: memref<16x2xf32, #tpu.memory_space<vmem>>, %arg3: memref<2x16xf32, #tpu.memory_space<vmem>>, %arg4: memref<16x1xf32, #tpu.memory_space<vmem>>) attributes {dimension_semantics = [#tpu.dimension_semantics<parallel>], iteration_bounds = array<i64: 1>, scalar_prefetch = 0 : i64, scratch_operands = 0 : i64, tpu.core_type = #tpu.core_type<tc>, window_params = [{pipeline_mode = #tpu.pipeline_mode<synchronous>, transform_indices = @transform_0, window_bounds = array<i64: 16, 32>}, {pipeline_mode = #tpu.pipeline_mode<synchronous>, transform_indices = @transform_1, window_bounds = array<i64: 16, 2>}, {pipeline_mode = #tpu.pipeline_mode<synchronous>, transform_indices = @transform_2, window_bounds = array<i64: 2, 16>}, {transform_indices = @transform_3, window_bounds = array<i64: 16, 1>}]} {
    %c16_i32 = arith.constant 16 : i32
    %0 = arith.muli %arg0, %c16_i32 : i32
    %1 = tpu.assume_multiple %0, 16 : i32
    %c0 = arith.constant 0 : index
    %c0_0 = arith.constant 0 : index
    %2 = vector.load %arg1[%c0, %c0_0] : memref<16x32xbf16, #tpu.memory_space<vmem>>, vector<16x32xbf16>
    %3 = arith.index_cast %1 : i32 to index
    %c0_1 = arith.constant 0 : index
    %4 = vector.load %arg1[%3, %c0_1] : memref<16x32xbf16, #tpu.memory_space<vmem>>, vector<16x32xbf16>
    %cst = arith.constant dense<0.000000e+00> : vector<16x16xf32>
    %5 = tpu.matmul %4, %2, %cst {dimension_numbers = #tpu.dot_dimension_numbers<[1], [1], [0], [0], [0, 0, 1, 0], [], []>} : vector<16x32xbf16>, vector<16x32xbf16>, vector<16x16xf32> -> vector<16x16xf32>
    %6 = arith.index_cast %1 : i32 to index
    %c0_2 = arith.constant 0 : index
    %7 = vector.load %arg2[%6, %c0_2] : memref<16x2xf32, #tpu.memory_space<vmem>>, vector<16x2xf32>
    %8 = vector.extract_strided_slice %7 {offsets = [0, 0], sizes = [16, 1], strides = [1, 1]} : vector<16x2xf32> to vector<16x1xf32>
    %9 = vector.extract_strided_slice %7 {offsets = [0, 1], sizes = [16, 1], strides = [1, 1]} : vector<16x2xf32> to vector<16x1xf32>
    %c0_3 = arith.constant 0 : index
    %c0_4 = arith.constant 0 : index
    %10 = vector.load %arg3[%c0_3, %c0_4] : memref<2x16xf32, #tpu.memory_space<vmem>>, vector<1x16xf32>
    %c1 = arith.constant 1 : index
    %c0_5 = arith.constant 0 : index
    %11 = vector.load %arg3[%c1, %c0_5] : memref<2x16xf32, #tpu.memory_space<vmem>>, vector<1x16xf32>
    %12 = tpu.iota {dimensions = array<i32: 1>} : vector<16x16xi32>
    %13 = tpu.iota {dimensions = array<i32: 0>} : vector<16x16xi32>
    %14 = vector.broadcast %1 : i32 to vector<16x16xi32>
    %15 = arith.addi %13, %14 : vector<16x16xi32>
    %c8_i32 = arith.constant 8 : i32
    %16 = vector.broadcast %c8_i32 : i32 to vector<16x16xi32>
    %17 = arith.cmpi slt, %12, %16 : vector<16x16xi32>
    %18 = arith.cmpi ne, %12, %15 : vector<16x16xi32>
    %19 = arith.andi %17, %18 : vector<16x16xi1>
    %20 = vector.broadcast %8 : vector<16x1xf32> to vector<16x16xf32>
    %21 = vector.broadcast %10 : vector<1x16xf32> to vector<16x16xf32>
    %22 = arith.cmpf oeq, %20, %21 : vector<16x16xf32>
    %23 = vector.broadcast %9 : vector<16x1xf32> to vector<16x16xf32>
    %24 = vector.broadcast %11 : vector<1x16xf32> to vector<16x16xf32>
    %25 = arith.subf %23, %24 : vector<16x16xf32>
    %26 = math.absf %25 : vector<16x16xf32>
    %cst_6 = arith.constant 2.000000e-01 : f32
    %27 = vector.broadcast %cst_6 : f32 to vector<16x16xf32>
    %28 = arith.mulf %26, %27 : vector<16x16xf32>
    %cst_7 = arith.constant 0.000000e+00 : f32
    %cst_8 = arith.constant 2.000000e+00 : f32
    %29 = vector.broadcast %cst_7 : f32 to vector<16x16xf32>
    %30 = arith.maximumf %29, %28 : vector<16x16xf32>
    %31 = vector.broadcast %cst_8 : f32 to vector<16x16xf32>
    %32 = arith.minimumf %31, %30 : vector<16x16xf32>
    %cst_9 = arith.constant 1.000000e+00 : f32
    %33 = vector.broadcast %cst_9 : f32 to vector<16x16xf32>
    %34 = arith.mulf %5, %33 : vector<16x16xf32>
    %cst_10 = arith.constant 0.000000e+00 : f32
    %35 = vector.broadcast %cst_10 : f32 to vector<16x16xf32>
    %36 = arith.select %22, %35, %32 : vector<16x16xi1>, vector<16x16xf32>
    %37 = arith.addf %34, %36 : vector<16x16xf32>
    %cst_11 = arith.constant -1.000000e+30 : f32
    %38 = vector.broadcast %cst_11 : f32 to vector<16x16xf32>
    %39 = arith.select %17, %37, %38 : vector<16x16xi1>, vector<16x16xf32>
    %cst_12 = arith.constant dense<0xFF800000> : vector<16xf32>
    %40 = vector.multi_reduction <maximumf>, %39, %cst_12 [1] : vector<16x16xf32> to vector<16xf32>
    %41 = vector.shape_cast %40 : vector<16xf32> to vector<16x1xf32>
    %cst_13 = arith.constant -1.000000e+30 : f32
    %42 = vector.broadcast %cst_13 : f32 to vector<16x16xf32>
    %43 = arith.select %19, %37, %42 : vector<16x16xi1>, vector<16x16xf32>
    %44 = vector.broadcast %41 : vector<16x1xf32> to vector<16x16xf32>
    %45 = arith.subf %43, %44 : vector<16x16xf32>
    %46 = math.exp %45 : vector<16x16xf32>
    %cst_14 = arith.constant dense<0.000000e+00> : vector<16xf32>
    %47 = vector.multi_reduction <add>, %46, %cst_14 [1] : vector<16x16xf32> to vector<16xf32>
    %48 = vector.shape_cast %47 : vector<16xf32> to vector<16x1xf32>
    %49 = arith.andi %22, %19 : vector<16x16xi1>
    %50 = arith.extui %49 : vector<16x16xi1> to vector<16x16xi32>
    %51 = arith.sitofp %50 : vector<16x16xi32> to vector<16x16xf32>
    %cst_15 = arith.constant dense<0.000000e+00> : vector<16xf32>
    %52 = vector.multi_reduction <add>, %51, %cst_15 [1] : vector<16x16xf32> to vector<16xf32>
    %53 = vector.shape_cast %52 : vector<16xf32> to vector<16x1xf32>
    %cst_16 = arith.constant 0.000000e+00 : f32
    %54 = vector.broadcast %cst_16 : f32 to vector<16x16xf32>
    %55 = arith.select %49, %37, %54 : vector<16x16xi1>, vector<16x16xf32>
    %cst_17 = arith.constant dense<0.000000e+00> : vector<16xf32>
    %56 = vector.multi_reduction <add>, %55, %cst_17 [1] : vector<16x16xf32> to vector<16xf32>
    %57 = vector.shape_cast %56 : vector<16xf32> to vector<16x1xf32>
    %58 = math.log %48 : vector<16x1xf32>
    %59 = arith.addf %41, %58 : vector<16x1xf32>
    %60 = arith.mulf %53, %59 : vector<16x1xf32>
    %61 = arith.subf %57, %60 : vector<16x1xf32>
    %cst_18 = arith.constant 9.99999974E-6 : f32
    %62 = vector.broadcast %cst_18 : f32 to vector<16x1xf32>
    %63 = arith.addf %61, %62 : vector<16x1xf32>
    %cst_19 = arith.constant 9.99999974E-6 : f32
    %64 = vector.broadcast %cst_19 : f32 to vector<16x1xf32>
    %65 = arith.addf %53, %64 : vector<16x1xf32>
    %66 = arith.divf %63, %65 : vector<16x1xf32>
    %cst_20 = arith.constant -1.000000e+00 : f32
    %67 = vector.broadcast %cst_20 : f32 to vector<16x1xf32>
    %68 = arith.mulf %67, %66 : vector<16x1xf32>
    %c0_21 = arith.constant 0 : index
    %c0_22 = arith.constant 0 : index
    %69 = vector.load %arg4[%c0_21, %c0_22] : memref<16x1xf32, #tpu.memory_space<vmem>>, vector<16x1xf32>
    tpu.vector_store %arg4[%c0_21, %c0_22], %68 {strides = array<i32>} : memref<16x1xf32, #tpu.memory_space<vmem>>, vector<16x1xf32>,
    return
  }
  func.func @transform_0(%arg0: i32) -> (i32, i32) {
    %c0_i32 = arith.constant 0 : i32
    %c0_i32_0 = arith.constant 0 : i32
    %c0_i32_1 = arith.constant 0 : i32
    return %c0_i32, %c0_i32_0 : i32, i32
  }
  func.func @transform_1(%arg0: i32) -> (i32, i32) {
    %c0_i32 = arith.constant 0 : i32
    %c0_i32_0 = arith.constant 0 : i32
    %c0_i32_1 = arith.constant 0 : i32
    return %c0_i32, %c0_i32_0 : i32, i32
  }
  func.func @transform_2(%arg0: i32) -> (i32, i32) {
    %c0_i32 = arith.constant 0 : i32
    %c0_i32_0 = arith.constant 0 : i32
    %c0_i32_1 = arith.constant 0 : i32
    return %c0_i32, %c0_i32_0 : i32, i32
  }
  func.func @transform_3(%arg0: i32) -> (i32, i32) {
    %c0_i32 = arith.constant 0 : i32
    %c0_i32_0 = arith.constant 0 : i32
    return %arg0, %c0_i32 : i32, i32
  }
}

module attributes {stable_mosaic.version = 11 : i64} {
  func.func @supcon_admargin_kernel(%arg0: i32, %arg1: memref<16x32xbf16, #tpu.memory_space<vmem>>, %arg2: memref<16x2xf32, #tpu.memory_space<vmem>>, %arg3: memref<2x16xf32, #tpu.memory_space<vmem>>, %arg4: memref<16x1xf32, #tpu.memory_space<vmem>>) attributes {dimension_semantics = [#tpu.dimension_semantics<parallel>], iteration_bounds = array<i64: 1>, scalar_prefetch = 0 : i64, scratch_operands = 0 : i64, tpu.core_type = #tpu.core_type<tc>, window_params = [{pipeline_mode = #tpu.pipeline_mode<synchronous>, transform_indices = @transform_0, window_bounds = array<i64: 16, 32>}, {pipeline_mode = #tpu.pipeline_mode<synchronous>, transform_indices = @transform_1, window_bounds = array<i64: 16, 2>}, {pipeline_mode = #tpu.pipeline_mode<synchronous>, transform_indices = @transform_2, window_bounds = array<i64: 2, 16>}, {transform_indices = @transform_3, window_bounds = array<i64: 16, 1>}]} {
    %c16_i32 = arith.constant 16 : i32
    %0 = arith.muli %arg0, %c16_i32 : i32
    %1 = tpu.assume_multiple %0, 16 : i32
    %c0 = arith.constant 0 : index
    %c0_0 = arith.constant 0 : index
    %2 = vector.load %arg1[%c0, %c0_0] : memref<16x32xbf16, #tpu.memory_space<vmem>>, vector<16x32xbf16>
    %3 = arith.index_cast %1 : i32 to index
    %c0_1 = arith.constant 0 : index
    %4 = vector.load %arg1[%3, %c0_1] : memref<16x32xbf16, #tpu.memory_space<vmem>>, vector<16x32xbf16>
    %cst = arith.constant dense<0.000000e+00> : vector<16x16xf32>
    %5 = tpu.matmul %4, %2, %cst {dimension_numbers = #tpu.dot_dimension_numbers<[1], [1], [0], [0], [0, 0, 1, 0], [], []>} : vector<16x32xbf16>, vector<16x32xbf16>, vector<16x16xf32> -> vector<16x16xf32>
    %6 = arith.index_cast %1 : i32 to index
    %c0_2 = arith.constant 0 : index
    %7 = vector.load %arg2[%6, %c0_2] : memref<16x2xf32, #tpu.memory_space<vmem>>, vector<16x2xf32>
    %8 = vector.extract_strided_slice %7 {offsets = [0, 0], sizes = [16, 1], strides = [1, 1]} : vector<16x2xf32> to vector<16x1xf32>
    %9 = vector.extract_strided_slice %7 {offsets = [0, 1], sizes = [16, 1], strides = [1, 1]} : vector<16x2xf32> to vector<16x1xf32>
    %c0_3 = arith.constant 0 : index
    %c0_4 = arith.constant 0 : index
    %10 = vector.load %arg3[%c0_3, %c0_4] : memref<2x16xf32, #tpu.memory_space<vmem>>, vector<1x16xf32>
    %c1 = arith.constant 1 : index
    %c0_5 = arith.constant 0 : index
    %11 = vector.load %arg3[%c1, %c0_5] : memref<2x16xf32, #tpu.memory_space<vmem>>, vector<1x16xf32>
    %12 = tpu.iota {dimensions = array<i32: 1>} : vector<16x16xi32>
    %13 = tpu.iota {dimensions = array<i32: 0>} : vector<16x16xi32>
    %14 = vector.broadcast %1 : i32 to vector<16x16xi32>
    %15 = arith.addi %13, %14 : vector<16x16xi32>
    %c8_i32 = arith.constant 8 : i32
    %16 = vector.broadcast %c8_i32 : i32 to vector<16x16xi32>
    %17 = arith.cmpi slt, %12, %16 : vector<16x16xi32>
    %18 = arith.cmpi ne, %12, %15 : vector<16x16xi32>
    %19 = arith.andi %17, %18 : vector<16x16xi1>
    %20 = vector.broadcast %8 : vector<16x1xf32> to vector<16x16xf32>
    %21 = vector.broadcast %10 : vector<1x16xf32> to vector<16x16xf32>
    %22 = arith.cmpf oeq, %20, %21 : vector<16x16xf32>
    %23 = vector.broadcast %9 : vector<16x1xf32> to vector<16x16xf32>
    %24 = vector.broadcast %11 : vector<1x16xf32> to vector<16x16xf32>
    %25 = arith.subf %23, %24 : vector<16x16xf32>
    %26 = math.absf %25 : vector<16x16xf32>
    %cst_6 = arith.constant 2.000000e-01 : f32
    %27 = vector.broadcast %cst_6 : f32 to vector<16x16xf32>
    %28 = arith.mulf %26, %27 : vector<16x16xf32>
    %cst_7 = arith.constant 0.000000e+00 : f32
    %cst_8 = arith.constant 2.000000e+00 : f32
    %29 = vector.broadcast %cst_7 : f32 to vector<16x16xf32>
    %30 = arith.maximumf %29, %28 : vector<16x16xf32>
    %31 = vector.broadcast %cst_8 : f32 to vector<16x16xf32>
    %32 = arith.minimumf %31, %30 : vector<16x16xf32>
    %cst_9 = arith.constant 1.000000e+00 : f32
    %33 = vector.broadcast %cst_9 : f32 to vector<16x16xf32>
    %34 = arith.mulf %5, %33 : vector<16x16xf32>
    %cst_10 = arith.constant 0.000000e+00 : f32
    %35 = vector.broadcast %cst_10 : f32 to vector<16x16xf32>
    %36 = arith.select %22, %35, %32 : vector<16x16xi1>, vector<16x16xf32>
    %37 = arith.addf %34, %36 : vector<16x16xf32>
    %cst_11 = arith.constant -1.000000e+30 : f32
    %38 = vector.broadcast %cst_11 : f32 to vector<16x16xf32>
    %39 = arith.select %17, %37, %38 : vector<16x16xi1>, vector<16x16xf32>
    %cst_12 = arith.constant dense<0xFF800000> : vector<16xf32>
    %40 = vector.multi_reduction <maximumf>, %39, %cst_12 [1] : vector<16x16xf32> to vector<16xf32>
    %41 = vector.shape_cast %40 : vector<16xf32> to vector<16x1xf32>
    %cst_13 = arith.constant -1.000000e+30 : f32
    %42 = vector.broadcast %cst_13 : f32 to vector<16x16xf32>
    %43 = arith.select %19, %37, %42 : vector<16x16xi1>, vector<16x16xf32>
    %44 = vector.broadcast %41 : vector<16x1xf32> to vector<16x16xf32>
    %45 = arith.subf %43, %44 : vector<16x16xf32>
    %46 = math.exp %45 : vector<16x16xf32>
    %cst_14 = arith.constant dense<0.000000e+00> : vector<16xf32>
    %47 = vector.multi_reduction <add>, %46, %cst_14 [1] : vector<16x16xf32> to vector<16xf32>
    %48 = vector.shape_cast %47 : vector<16xf32> to vector<16x1xf32>
    %49 = arith.andi %22, %19 : vector<16x16xi1>
    %50 = arith.extui %49 : vector<16x16xi1> to vector<16x16xi32>
    %51 = arith.sitofp %50 : vector<16x16xi32> to vector<16x16xf32>
    %cst_15 = arith.constant dense<0.000000e+00> : vector<16xf32>
    %52 = vector.multi_reduction <add>, %51, %cst_15 [1] : vector<16x16xf32> to vector<16xf32>
    %53 = vector.shape_cast %52 : vector<16xf32> to vector<16x1xf32>
    %cst_16 = arith.constant 0.000000e+00 : f32
    %54 = vector.broadcast %cst_16 : f32 to vector<16x16xf32>
    %55 = arith.select %49, %37, %54 : vector<16x16xi1>, vector<16x16xf32>
    %cst_17 = arith.constant dense<0.000000e+00> : vector<16xf32>
    %56 = vector.multi_reduction <add>, %55, %cst_17 [1] : vector<16x16xf32> to vector<16xf32>
    %57 = vector.shape_cast %56 : vector<16xf32> to vector<16x1xf32>
    %58 = math.log %48 : vector<16x1xf32>
    %59 = arith.addf %41, %58 : vector<16x1xf32>
    %60 = arith.mulf %53, %59 : vector<16x1xf32>
    %61 = arith.subf %57, %60 : vector<16x1xf32>
    %cst_18 = arith.constant 9.99999974E-6 : f32
    %62 = vector.broadcast %cst_18 : f32 to vector<16x1xf32>
    %63 = arith.addf %61, %62 : vector<16x1xf32>
    %cst_19 = arith.constant 9.99999974E-6 : f32
    %64 = vector.broadcast %cst_19 : f32 to vector<16x1xf32>
    %65 = arith.addf %53, %64 : vector<16x1xf32>
    %66 = arith.divf %63, %65 : vector<16x1xf32>
    %cst_20 = arith.constant -1.000000e+00 : f32
    %67 = vector.broadcast %cst_20 : f32 to vector<16x1xf32>
    %68 = arith.mulf %67, %66 : vector<16x1xf32>
    %c0_21 = arith.constant 0 : index
    %c0_22 = arith.constant 0 : index
    %69 = vector.load %arg4[%c0_21, %c0_22] : memref<16x1xf32, #tpu.memory_space<vmem>>, vector<16x1xf32>
    tpu.vector_store %arg4[%c0_21, %c0_22], %68 {strides = array<i32>} : memref<16x1xf32, #tpu.memory_space<vmem>>, vector<16x1xf32>,
    return
  }
  func.func @transform_0(%arg0: i32) -> (i32, i32) {
    %c0_i32 = arith.constant 0 : i32
    %c0_i32_0 = arith.constant 0 : i32
    %c0_i32_1 = arith.constant 0 : i32
    return %c0_i32, %c0_i32_0 : i32, i32
  }
  func.func @transform_1(%arg0: i32) -> (i32, i32) {
    %c0_i32 = arith.constant 0 : i32
    %c0_i32_0 = arith.constant 0 : i32
    %c0_i32_1 = arith.constant 0 : i32
    return %c0_i32, %c0_i32_0 : i32, i32
  }
  func.func @transform_2(%arg0: i32) -> (i32, i32) {
    %c0_i32 = arith.constant 0 : i32
    %c0_i32_0 = arith.constant 0 : i32
    %c0_i32_1 = arith.constant 0 : i32
    return %c0_i32, %c0_i32_0 : i32, i32
  }
  func.func @transform_3(%arg0: i32) -> (i32, i32) {
    %c0_i32 = arith.constant 0 : i32
    %c0_i32_0 = arith.constant 0 : i32
    return %arg0, %c0_i32 : i32, i32
  }
}

</mosaic_0001>

<bundles_post_ra>
// kernel: tpu_custom_call.1
= control target key start
LH: loop header
LB: loop body
LE: loop exit
PB: predicated region body
PF: predicated region fallthrough
CT: control target
= control target key end

     0   :  { %vm92_vm0 = vcmask 261120   ;;  %v247_v0 = vmov 0.0   ;;  %vm248_vm1 = vmmov 0   ;;  %v249_v2 = vmov 1   ;;  %s339_s0 = inlined_call_operand.vmem [shape: bf16[16,32], index: 0, kind: input, shape index: {}]   ;;  %s340_s1 = inlined_call_operand.vmem [shape: f32[16,2], index: 1, kind: input, shape index: {}]   ;;  %s341_s2 = inlined_call_operand.vmem [shape: f32[2,16], index: 2, kind: input, shape index: {}]   ;;  %s342_s3 = inlined_call_operand.vmem [shape: f32[16,1], index: 3, kind: output, shape index: {}]  }
   0x1   :  { %221 = vmatprep.subr.bf16.mxu0 %v247_v0  ;;  %v233_v1 = vld [vmem:[%s339_s0] sm:$0xff]   ;;  %223 = vmatprep.mubr.msk.bf16.mxu0 %vm248_vm1, %v247_v0  ;;  %v250_v3 = vmov 0   ;;  %v26_v6 = vld [vmem:[%s340_s1 + $0x8] sm:$0xff]  ;;  %v29_v8 = vlaneseq  ;;  %vm142_vm10 = vcmask 130048   ;;  %vm203_vm12 = vcmask 7168  }
   0x2   :  { %231 = vset.pattern.permute.xlu0 %v249_v2  ;;  %232 = vset.pattern.permute.xlu1 %v250_v3  ;;  %v97_v4 = vsel %vm92_vm0, %v233_v1, 0  ;;  %v25_v5 = vld [vmem:[%s340_s1] sm:$0xff] }
   0x3   :  { %222 = vmatpush3.bf16.xpose.msra.mxu0 %v97_v4  ;;  %59 = vperm.xlu0 %231, %v25_v5   ;;  %v234_v7 = vld [vmem:[%s339_s0] sm:$0xff]   ;;  %v30_v9 = vand.u32 127, %v29_v8  ;;  %v32_v10 = vshrl.u32 %v29_v8, 7 }
   0x4   :  { %44 = vperm.xlu1 %232, %v25_v5   ;;  %v212_v13 = vld [vmem:[%s341_s2] ss:$0 sm:$0xff]  ;;  %v213_v18 = vld [vmem:[%s341_s2 + $0x1] ss:$0 sm:$0xff] }
   0x5   :  { %v33_v11 = vadd.s32 8, %v32_v10  ;;  %vm37_vm3 = vcmp.lt.s32.totalorder %v30_v9, 8  ;;  %vm38_vm8 = vcmp.ne.s32.totalorder %v30_v9, %v32_v10 }
   0x6   :  { %vm306_vm9 = vmand %vm37_vm3, %vm38_vm8 }
   0x7   :  { %63 = vperm.xlu0 %231, %v26_v6   ;;  %vm39_vm2 = vcmp.ne.s32.totalorder %v30_v9, %v33_v11 }
   0x8   :  { %49 = vperm.xlu1 %232, %v26_v6   ;;  %vm291_vm4 = vmand %vm37_vm3, %vm39_vm2 }
   0xa   :  { %224 = vmatmul.mubr.msk.bf16.vlgmr.msra.gmra.mrb[0].mxu0 %vm92_vm0, %v234_v7 }
  0x82   :  { %v60_v17 = vpop.permute.xlu0 %59 }
  0x83   :  { %v45_v12 = vpop.permute.xlu1 %44  ;;  %v70_v19 = vsub.f32 %v60_v17, %v213_v18 }
  0x84   :  { %vm56_vm7 = vcmp.eq.f32.partialorder %v45_v12, %v212_v13 }
  0x85   :  { %v72_v21 = vand.u32 2147483647, %v70_v19  ;;  %vm163_vm11 = vmand %vm56_vm7, %vm306_vm9 }
  0x86   :  { %v64_v20 = vpop.permute.xlu0 %63  ;;  %v217_v45 = vsel %vm163_vm11, 1.0, %v247_v0 }
  0x87   :  { %v50_v15 = vpop.permute.xlu1 %49  ;;  %v71_v22 = vsub.f32 %v64_v20, %v213_v18  ;;  %v74_v23 = vmul.f32 0.2, %v72_v21  ;;  %v169_v46 = vsel %vm142_vm10, %v217_v45, 0.0 }
  0x88   :  { %vm57_vm5 = vcmp.eq.f32.partialorder %v50_v15, %v212_v13 }
  0x89   :  { %vm298_vm6 = vmand %vm57_vm5, %vm291_vm4  ;;  %v73_v24 = vand.u32 2147483647, %v71_v22  ;;  %v76_v25 = vmax.f32 %v74_v23, 0.0 }
  0x8a   :  { %v218_v60 = vsel %vm298_vm6, 1.0, %v247_v0 }
  0x8b   :  { %v75_v26 = vmul.f32 0.2, %v73_v24  ;;  %v78_v27 = vmin.f32 %v76_v25, 2.0  ;;  %v172_v61 = vsel %vm142_vm10, %v218_v60, 0.0 }
  0x8d   :  { %v77_v28 = vmax.f32 %v75_v26, 0.0  ;;  %v80_v30 = vsel %vm56_vm7, 0.0, %v78_v27 }
  0x8f   :  { %v79_v29 = vmin.f32 %v77_v28, 2.0 }
  0x91   :  { %v81_v35 = vsel %vm57_vm5, 0.0, %v79_v29 }
  0xdd   :  { %v133_v31 = vpop.f32.mrb[0].mxu0 }
  0xde   :  { %v134_v33 = vadd.f32 %v133_v31, %v80_v30  ;;  %v225_v34 = vpop.f32.mrb[1].mxu0 }
  0xdf   :  { %v136_v36 = vpop.f32.mrb[2].mxu0 }
  0xe0   :  { %v137_v37 = vadd.f32 %v136_v36, %v81_v35  ;;  %v226_v38 = vpop.f32.mrb[3].mxu0  ;;  %v140_v39 = vsel %vm37_vm3, %v134_v33, -1e+30  ;;  %v175_v47 = vsel %vm163_vm11, %v134_v33, 0.0  ;;  %v149_v49 = vsel %vm306_vm9, %v134_v33, -1e+30 }
  0xe1   :  { %v143_v40 = vsel %vm142_vm10, %v140_v39, -inf  ;;  %v177_v48 = vsel %vm142_vm10, %v175_v47, 0.0 }
  0xe2   :  { %144 = vmax.xlane.f32.xlu0 %v143_v40  ;;  %v141_v41 = vsel %vm37_vm3, %v137_v37, -1e+30  ;;  %v150_v42 = vsel %vm291_vm4, %v137_v37, -1e+30  ;;  %v176_v43 = vsel %vm298_vm6, %v137_v37, 0.0 }
  0xe3   :  { %v146_v44 = vsel %vm142_vm10, %v141_v41, -inf  ;;  %v180_v62 = vsel %vm142_vm10, %v176_v43, 0.0 }
  0xe4   :  { %147 = vmax.xlane.f32.xlu1 %v146_v44 }
  0xe8   :  { %170 = vadd.xlane.f32.xlu1 %v169_v46 }
  0xec   :  { %178 = vadd.xlane.f32.xlu1 %v177_v48 }
 0x16f   :  { %v145_v50 = vpop.xlane.xlu0 %144 }
 0x170   :  { %v151_v51 = vsub.f32 %v149_v49, %v145_v50 }
 0x171   :  { %v148_v52 = vpop.xlane.xlu1 %147 }
 0x172   :  { %v153_v53 = vmul.f32 1.442695, %v151_v51  ;;  %v152_v54 = vsub.f32 %v150_v42, %v148_v52 }
 0x174   :  { %235 = vpow2.f32 %v153_v53  ;;  %v155_v55 = vmul.f32 1.442695, %v152_v54 }
 0x175   :  { %v171_v1 = vpop.xlane.xlu1 %170 }
 0x176   :  { %237 = vpow2.f32 %v155_v55  ;;  %v195_v3 = vadd.f32 1e-05, %v171_v1 }
 0x179   :  { %v179_v11 = vpop.xlane.xlu1 %178 }
 0x17e   :  { %v236_v56 = vpop.eup %235 }
 0x17f   :  { %v157_v57 = vsel %vm142_vm10, %v236_v56, 0.0 }
 0x180   :  { %v238_v58 = vpop.eup %237  ;;  %158 = vadd.xlane.f32.xlu0 %v157_v57 }
 0x181   :  { %v160_v59 = vsel %vm142_vm10, %v238_v58, 0.0 }
 0x184   :  { %161 = vadd.xlane.f32.xlu0 %v160_v59 }
 0x188   :  { %173 = vadd.xlane.f32.xlu0 %v172_v61 }
 0x18c   :  { %181 = vadd.xlane.f32.xlu0 %v180_v62 }
 0x20d   :  { %v159_v63 = vpop.xlane.xlu0 %158 }
 0x20e   :  { %239 = vlog2.f32 %v159_v63 }
 0x211   :  { %v162_v2 = vpop.xlane.xlu0 %161 }
 0x212   :  { %241 = vlog2.f32 %v162_v2 }
 0x213   :  { %243 = vrcp.f32 %v195_v3 }
 0x215   :  { %v174_v4 = vpop.xlane.xlu0 %173 }
 0x216   :  { %v196_v6 = vadd.f32 1e-05, %v174_v4 }
 0x218   :  { %v240_v5 = vpop.eup %239  ;;  %245 = vrcp.f32 %v196_v6 }
 0x219   :  { %v184_v7 = vmul.f32 0.6931472, %v240_v5  ;;  %v182_v17 = vpop.xlane.xlu0 %181 }
 0x21b   :  { %v187_v8 = vadd.f32 %v184_v7, %v145_v50 }
 0x21c   :  { %v242_v9 = vpop.eup %241 }
 0x21d   :  { %v189_v0 = vmul.f32 %v187_v8, %v171_v1  ;;  %v186_v10 = vmul.f32 0.6931472, %v242_v9  ;;  %v244_v16 = vpop.eup %243 }
 0x21f   :  { %v191_v12 = vsub.f32 %v179_v11, %v189_v0  ;;  %v188_v13 = vadd.f32 %v186_v10, %v148_v52 }
 0x221   :  { %v193_v14 = vadd.f32 1e-05, %v191_v12  ;;  %v190_v15 = vmul.f32 %v188_v13, %v174_v4 }
 0x222   :  { %v246_v22 = vpop.eup %245 }
 0x223   :  { %v198_v18 = vmul.f32 %v244_v16, %v193_v14  ;;  %v192_v19 = vsub.f32 %v182_v17, %v190_v15 }
 0x225   :  { %v201_v20 = vmul.f32 -1.0, %v198_v18  ;;  %v194_v21 = vadd.f32 1e-05, %v192_v19 }
 0x227   :  { %v200_v23 = vmul.f32 %v246_v22, %v194_v21  ;;  %204 = vst.msk [vmem:[%s342_s3] sm:$0xff] %vm203_vm12, %v201_v20 }
 0x229   :  { %v202_v24 = vmul.f32 -1.0, %v200_v23 }
 0x22b   :  { %205 = vst.msk [vmem:[%s342_s3 + $0x8] sm:$0xff] %vm203_vm12, %v202_v24 }

// kernel: tpu_custom_call.1
= control target key start
LH: loop header
LB: loop body
LE: loop exit
PB: predicated region body
PF: predicated region fallthrough
CT: control target
= control target key end

     0   :  { %vm92_vm0 = vcmask 261120   ;;  %v247_v0 = vmov 0.0   ;;  %vm248_vm1 = vmmov 0   ;;  %v249_v2 = vmov 1   ;;  %s339_s0 = inlined_call_operand.vmem [shape: bf16[16,32], index: 0, kind: input, shape index: {}]   ;;  %s340_s1 = inlined_call_operand.vmem [shape: f32[16,2], index: 1, kind: input, shape index: {}]   ;;  %s341_s2 = inlined_call_operand.vmem [shape: f32[2,16], index: 2, kind: input, shape index: {}]   ;;  %s342_s3 = inlined_call_operand.vmem [shape: f32[16,1], index: 3, kind: output, shape index: {}]  }
   0x1   :  { %221 = vmatprep.subr.bf16.mxu0 %v247_v0  ;;  %v233_v1 = vld [vmem:[%s339_s0] sm:$0xff]   ;;  %223 = vmatprep.mubr.msk.bf16.mxu0 %vm248_vm1, %v247_v0  ;;  %v250_v3 = vmov 0   ;;  %v26_v6 = vld [vmem:[%s340_s1 + $0x8] sm:$0xff]  ;;  %v29_v8 = vlaneseq  ;;  %vm142_vm10 = vcmask 130048   ;;  %vm203_vm12 = vcmask 7168  }
   0x2   :  { %231 = vset.pattern.permute.xlu0 %v249_v2  ;;  %232 = vset.pattern.permute.xlu1 %v250_v3  ;;  %v97_v4 = vsel %vm92_vm0, %v233_v1, 0  ;;  %v25_v5 = vld [vmem:[%s340_s1] sm:$0xff] }
   0x3   :  { %222 = vmatpush3.bf16.xpose.msra.mxu0 %v97_v4  ;;  %59 = vperm.xlu0 %231, %v25_v5   ;;  %v234_v7 = vld [vmem:[%s339_s0] sm:$0xff]   ;;  %v30_v9 = vand.u32 127, %v29_v8  ;;  %v32_v10 = vshrl.u32 %v29_v8, 7 }
   0x4   :  { %44 = vperm.xlu1 %232, %v25_v5   ;;  %v212_v13 = vld [vmem:[%s341_s2] ss:$0 sm:$0xff]  ;;  %v213_v18 = vld [vmem:[%s341_s2 + $0x1] ss:$0 sm:$0xff] }
   0x5   :  { %v33_v11 = vadd.s32 8, %v32_v10  ;;  %vm37_vm3 = vcmp.lt.s32.totalorder %v30_v9, 8  ;;  %vm38_vm8 = vcmp.ne.s32.totalorder %v30_v9, %v32_v10 }
   0x6   :  { %vm306_vm9 = vmand %vm37_vm3, %vm38_vm8 }
   0x7   :  { %63 = vperm.xlu0 %231, %v26_v6   ;;  %vm39_vm2 = vcmp.ne.s32.totalorder %v30_v9, %v33_v11 }
   0x8   :  { %49 = vperm.xlu1 %232, %v26_v6   ;;  %vm291_vm4 = vmand %vm37_vm3, %vm39_vm2 }
   0xa   :  { %224 = vmatmul.mubr.msk.bf16.vlgmr.msra.gmra.mrb[0].mxu0 %vm92_vm0, %v234_v7 }
  0x82   :  { %v60_v17 = vpop.permute.xlu0 %59 }
  0x83   :  { %v45_v12 = vpop.permute.xlu1 %44  ;;  %v70_v19 = vsub.f32 %v60_v17, %v213_v18 }
  0x84   :  { %vm56_vm7 = vcmp.eq.f32.partialorder %v45_v12, %v212_v13 }
  0x85   :  { %v72_v21 = vand.u32 2147483647, %v70_v19  ;;  %vm163_vm11 = vmand %vm56_vm7, %vm306_vm9 }
  0x86   :  { %v64_v20 = vpop.permute.xlu0 %63  ;;  %v217_v45 = vsel %vm163_vm11, 1.0, %v247_v0 }
  0x87   :  { %v50_v15 = vpop.permute.xlu1 %49  ;;  %v71_v22 = vsub.f32 %v64_v20, %v213_v18  ;;  %v74_v23 = vmul.f32 0.2, %v72_v21  ;;  %v169_v46 = vsel %vm142_vm10, %v217_v45, 0.0 }
  0x88   :  { %vm57_vm5 = vcmp.eq.f32.partialorder %v50_v15, %v212_v13 }
  0x89   :  { %vm298_vm6 = vmand %vm57_vm5, %vm291_vm4  ;;  %v73_v24 = vand.u32 2147483647, %v71_v22  ;;  %v76_v25 = vmax.f32 %v74_v23, 0.0 }
  0x8a   :  { %v218_v60 = vsel %vm298_vm6, 1.0, %v247_v0 }
  0x8b   :  { %v75_v26 = vmul.f32 0.2, %v73_v24  ;;  %v78_v27 = vmin.f32 %v76_v25, 2.0  ;;  %v172_v61 = vsel %vm142_vm10, %v218_v60, 0.0 }
  0x8d   :  { %v77_v28 = vmax.f32 %v75_v26, 0.0  ;;  %v80_v30 = vsel %vm56_vm7, 0.0, %v78_v27 }
  0x8f   :  { %v79_v29 = vmin.f32 %v77_v28, 2.0 }
  0x91   :  { %v81_v35 = vsel %vm57_vm5, 0.0, %v79_v29 }
  0xdd   :  { %v133_v31 = vpop.f32.mrb[0].mxu0 }
  0xde   :  { %v134_v33 = vadd.f32 %v133_v31, %v80_v30  ;;  %v225_v34 = vpop.f32.mrb[1].mxu0 }
  0xdf   :  { %v136_v36 = vpop.f32.mrb[2].mxu0 }
  0xe0   :  { %v137_v37 = vadd.f32 %v136_v36, %v81_v35  ;;  %v226_v38 = vpop.f32.mrb[3].mxu0  ;;  %v140_v39 = vsel %vm37_vm3, %v134_v33, -1e+30  ;;  %v175_v47 = vsel %vm163_vm11, %v134_v33, 0.0  ;;  %v149_v49 = vsel %vm306_vm9, %v134_v33, -1e+30 }
  0xe1   :  { %v143_v40 = vsel %vm142_vm10, %v140_v39, -inf  ;;  %v177_v48 = vsel %vm142_vm10, %v175_v47, 0.0 }
  0xe2   :  { %144 = vmax.xlane.f32.xlu0 %v143_v40  ;;  %v141_v41 = vsel %vm37_vm3, %v137_v37, -1e+30  ;;  %v150_v42 = vsel %vm291_vm4, %v137_v37, -1e+30  ;;  %v176_v43 = vsel %vm298_vm6, %v137_v37, 0.0 }
  0xe3   :  { %v146_v44 = vsel %vm142_vm10, %v141_v41, -inf  ;;  %v180_v62 = vsel %vm142_vm10, %v176_v43, 0.0 }
  0xe4   :  { %147 = vmax.xlane.f32.xlu1 %v146_v44 }
  0xe8   :  { %170 = vadd.xlane.f32.xlu1 %v169_v46 }
  0xec   :  { %178 = vadd.xlane.f32.xlu1 %v177_v48 }
 0x16f   :  { %v145_v50 = vpop.xlane.xlu0 %144 }
 0x170   :  { %v151_v51 = vsub.f32 %v149_v49, %v145_v50 }
 0x171   :  { %v148_v52 = vpop.xlane.xlu1 %147 }
 0x172   :  { %v153_v53 = vmul.f32 1.442695, %v151_v51  ;;  %v152_v54 = vsub.f32 %v150_v42, %v148_v52 }
 0x174   :  { %235 = vpow2.f32 %v153_v53  ;;  %v155_v55 = vmul.f32 1.442695, %v152_v54 }
 0x175   :  { %v171_v1 = vpop.xlane.xlu1 %170 }
 0x176   :  { %237 = vpow2.f32 %v155_v55  ;;  %v195_v3 = vadd.f32 1e-05, %v171_v1 }
 0x179   :  { %v179_v11 = vpop.xlane.xlu1 %178 }
 0x17e   :  { %v236_v56 = vpop.eup %235 }
 0x17f   :  { %v157_v57 = vsel %vm142_vm10, %v236_v56, 0.0 }
 0x180   :  { %v238_v58 = vpop.eup %237  ;;  %158 = vadd.xlane.f32.xlu0 %v157_v57 }
 0x181   :  { %v160_v59 = vsel %vm142_vm10, %v238_v58, 0.0 }
 0x184   :  { %161 = vadd.xlane.f32.xlu0 %v160_v59 }
 0x188   :  { %173 = vadd.xlane.f32.xlu0 %v172_v61 }
 0x18c   :  { %181 = vadd.xlane.f32.xlu0 %v180_v62 }
 0x20d   :  { %v159_v63 = vpop.xlane.xlu0 %158 }
 0x20e   :  { %239 = vlog2.f32 %v159_v63 }
 0x211   :  { %v162_v2 = vpop.xlane.xlu0 %161 }
 0x212   :  { %241 = vlog2.f32 %v162_v2 }
 0x213   :  { %243 = vrcp.f32 %v195_v3 }
 0x215   :  { %v174_v4 = vpop.xlane.xlu0 %173 }
 0x216   :  { %v196_v6 = vadd.f32 1e-05, %v174_v4 }
 0x218   :  { %v240_v5 = vpop.eup %239  ;;  %245 = vrcp.f32 %v196_v6 }
 0x219   :  { %v184_v7 = vmul.f32 0.6931472, %v240_v5  ;;  %v182_v17 = vpop.xlane.xlu0 %181 }
 0x21b   :  { %v187_v8 = vadd.f32 %v184_v7, %v145_v50 }
 0x21c   :  { %v242_v9 = vpop.eup %241 }
 0x21d   :  { %v189_v0 = vmul.f32 %v187_v8, %v171_v1  ;;  %v186_v10 = vmul.f32 0.6931472, %v242_v9  ;;  %v244_v16 = vpop.eup %243 }
 0x21f   :  { %v191_v12 = vsub.f32 %v179_v11, %v189_v0  ;;  %v188_v13 = vadd.f32 %v186_v10, %v148_v52 }
 0x221   :  { %v193_v14 = vadd.f32 1e-05, %v191_v12  ;;  %v190_v15 = vmul.f32 %v188_v13, %v174_v4 }
 0x222   :  { %v246_v22 = vpop.eup %245 }
 0x223   :  { %v198_v18 = vmul.f32 %v244_v16, %v193_v14  ;;  %v192_v19 = vsub.f32 %v182_v17, %v190_v15 }
 0x225   :  { %v201_v20 = vmul.f32 -1.0, %v198_v18  ;;  %v194_v21 = vadd.f32 1e-05, %v192_v19 }
 0x227   :  { %v200_v23 = vmul.f32 %v246_v22, %v194_v21  ;;  %204 = vst.msk [vmem:[%s342_s3] sm:$0xff] %vm203_vm12, %v201_v20 }
 0x229   :  { %v202_v24 = vmul.f32 -1.0, %v200_v23 }
 0x22b   :  { %205 = vst.msk [vmem:[%s342_s3 + $0x8] sm:$0xff] %vm203_vm12, %v202_v24 }

</bundles_post_ra>
